<compile_context>
chip_gen: v5e
topology: v5e:2x2
jax: 0.10.0
libtpu: 0.0.40
codegen_flags: <defaults>
</compile_context>

<pallas_src>
import jax
import jax.numpy as jnp
from jax.experimental import pallas as pl
from jax.experimental.pallas import tpu as pltpu


def _identity_kernel(x_ref, o_ref):
    # Pure copy: load the whole VMEM tile and store it unchanged.
    o_ref[...] = x_ref[...]


def _round_up(a: int, b: int) -> int:
    return ((a + b - 1) // b) * b


# Lane width (last dim of the 2-D view): full vreg lane occupancy.
_LANES = 128
# ~512 KiB per block; in + out double-buffered -> ~2 MiB VMEM, safe everywhere.
_TARGET_BLOCK_BYTES = 512 * 1024


@jax.jit
def dummy_module_forward(x: jax.Array) -> jax.Array:
    """Identity forward pass of DummyModule via a tiled Pallas TPU copy.

    Accepts any shape/dtype. The flat view is padded up to a whole number of
    (tile_rows, 128) blocks so every input takes the fast, fully pipelined
    path; padding is sliced off afterwards.
    """
    orig_shape = x.shape
    orig_dtype = x.dtype
    n = x.size

    if n == 0:
        # Nothing to copy; an empty pallas_call is pointless.
        return x

    itemsize = jnp.dtype(orig_dtype).itemsize
    # Sublane alignment: 8 for 32-bit, 16 for 16-bit, 32 for 8-bit dtypes.
    sub = max(8, 32 // max(itemsize, 1))

    # Rows of the (rows, 128) lane-dense view needed to hold all elements.
    rows_needed = -(-n // _LANES)  # ceil div

    # Tile rows: big enough for bandwidth, multiple of the sublane alignment,
    # but never (much) larger than the data itself.
    target_rows = max(sub, _TARGET_BLOCK_BYTES // (_LANES * itemsize))
    tile_rows = min(target_rows, _round_up(rows_needed, sub))

    # Pad the row count up to a multiple of the tile -> grid always divides
    # evenly; no remainder block, no masked partial stores.
    rows = _round_up(rows_needed, tile_rows)
    padded_n = rows * _LANES

    flat = x.reshape(-1)
    if padded_n != n:
        flat = jnp.pad(flat, (0, padded_n - n))
    x2 = flat.reshape(rows, _LANES)

    grid = (rows // tile_rows,)

    out2 = pl.pallas_call(
        _identity_kernel,
        out_shape=jax.ShapeDtypeStruct((rows, _LANES), orig_dtype),
        grid_spec=pltpu.PrefetchScalarGridSpec(
            num_scalar_prefetch=0,
            grid=grid,
            in_specs=[pl.BlockSpec((tile_rows, _LANES), lambda i: (i, 0))],
            out_specs=pl.BlockSpec((tile_rows, _LANES), lambda i: (i, 0)),
        ),
        # Identity: let the output reuse the input HBM buffer when the
        # producer is donatable (inside this jit the padded view always is).
        input_output_aliases={0: 0},
        compiler_params=pltpu.CompilerParams(
            dimension_semantics=("parallel",),
        ),
    )(x2)

    out_flat = out2.reshape(-1)
    if padded_n != n:
        out_flat = out_flat[:n]
    return out_flat.reshape(orig_shape)


if __name__ == "__main__":
    key = jax.random.PRNGKey(0)

    # Primary test: small NCHW input consistent with the module's forward.
    x = jax.random.normal(key, (2, 4, 16, 16), dtype=jnp.float32)
    y = dummy_module_forward(x)
    jax.block_until_ready(y)
    assert y.shape == x.shape and y.dtype == x.dtype
    assert bool(jnp.all(y == x))

    # Padded-path test: size not a multiple of 8*128.
    x_odd = jax.random.normal(jax.random.PRNGKey(1), (3, 5, 7), dtype=jnp.float32)
    y_odd = dummy_module_forward(x_odd)
    jax.block_until_ready(y_odd)
    assert y_odd.shape == x_odd.shape and y_odd.dtype == x_odd.dtype
    assert bool(jnp.all(y_odd == x_odd))

    # Packed-dtype test: bf16 uses 16-sublane-aligned tiles.
    x_bf16 = jax.random.normal(jax.random.PRNGKey(2), (2, 4, 16, 16)).astype(jnp.bfloat16)
    y_bf16 = dummy_module_forward(x_bf16)
    jax.block_until_ready(y_bf16)
    assert y_bf16.shape == x_bf16.shape and y_bf16.dtype == x_bf16.dtype
    assert bool(jnp.all(y_bf16 == x_bf16))

    print("KERNEL_OK")
</pallas_src>

<mosaic_0001>
module attributes {stable_mosaic.version = 11 : i64} {
  func.func @_identity_kernel(%arg0: i32, %arg1: memref<16x128xf32, #tpu.memory_space<vmem>>, %arg2: memref<16x128xf32, #tpu.memory_space<vmem>>) attributes {dimension_semantics = [#tpu.dimension_semantics<parallel>], iteration_bounds = array<i64: 1>, scalar_prefetch = 0 : i64, scratch_operands = 0 : i64, tpu.core_type = #tpu.core_type<tc>, window_params = [{transform_indices = @transform_0, window_bounds = array<i64: 16, 128>}, {transform_indices = @transform_1, window_bounds = array<i64: 16, 128>}]} {
    %c0 = arith.constant 0 : index
    %c0_0 = arith.constant 0 : index
    %0 = vector.load %arg1[%c0, %c0_0] : memref<16x128xf32, #tpu.memory_space<vmem>>, vector<16x128xf32>
    %c0_1 = arith.constant 0 : index
    %c0_2 = arith.constant 0 : index
    %1 = vector.load %arg2[%c0_1, %c0_2] : memref<16x128xf32, #tpu.memory_space<vmem>>, vector<16x128xf32>
    tpu.vector_store %arg2[%c0_1, %c0_2], %0 {strides = array<i32>} : memref<16x128xf32, #tpu.memory_space<vmem>>, vector<16x128xf32>,
    return
  }
  func.func @transform_0(%arg0: i32) -> (i32, i32) {
    %c0_i32 = arith.constant 0 : i32
    %c0_i32_0 = arith.constant 0 : i32
    return %arg0, %c0_i32 : i32, i32
  }
  func.func @transform_1(%arg0: i32) -> (i32, i32) {
    %c0_i32 = arith.constant 0 : i32
    %c0_i32_0 = arith.constant 0 : i32
    return %arg0, %c0_i32 : i32, i32
  }
}

</mosaic_0001>

<bundles_post_ra>
// kernel: dummy_module_forward.1
= control target key start
LH: loop header
LB: loop body
LE: loop exit
PB: predicated region body
PF: predicated region fallthrough
CT: control target
= control target key end

     0   :  { %s38_s0 = inlined_call_operand.vmem [shape: f32[16,128], index: 0, kind: input, shape index: {}, may-alias: {0,1}]   ;;  %s39_s1 = inlined_call_operand.vmem [shape: f32[16,128], index: 1, kind: output, shape index: {}, may-alias: {0,1}]  }
   0x1   :  { %v8_v0 = vld [vmem:[%s38_s0] sm:$0xff]  ;;  %v9_v1 = vld [vmem:[%s38_s0 + $0x8] sm:$0xff] }
   0x2   :  { %10 = vst [vmem:[%s39_s1] sm:$0xff] %v8_v0 }
   0x3   :  { %11 = vst [vmem:[%s39_s1 + $0x8] sm:$0xff] %v9_v1 }

</bundles_post_ra>
